<compile_context>
chip_gen: v7x
topology: tpu7x:2x2x1
jax: 0.10.0
libtpu: 0.0.40
codegen_flags: <defaults>
</compile_context>

<pallas_src>
import functools

import jax
import jax.numpy as jnp
from jax.experimental import pallas as pl
from jax.experimental.pallas import tpu as pltpu


# --------------------------------------------------------------------------- #
# Kernels
# --------------------------------------------------------------------------- #
def _fused_row_kernel(x_ref, w_ref, bs_ref, o_ref, *,
                      input_scale: float, module_scale: float, mxu_dtype):
    """Plan A: full hidden dim in one block.  o = is*x + ms*(x@W) + (ms*b)."""
    a = x_ref[...]
    w = w_ref[...]
    if mxu_dtype is not None:
        a = a.astype(mxu_dtype)
        w = w.astype(mxu_dtype)
    y = jnp.dot(a, w, preferred_element_type=jnp.float32)
    out = (input_scale * x_ref[...].astype(jnp.float32)
           + module_scale * y
           + bs_ref[...])                      # bias already scaled, f32
    o_ref[...] = out.astype(o_ref.dtype)


def _multi_k_kernel(x_ref, w_ref, bs_ref, o_ref, acc_ref, *,
                    input_scale: float, module_scale: float, mxu_dtype):
    """Plan B: K-streamed matmul; residual folded into acc at k == j."""
    j = pl.program_id(1)
    k = pl.program_id(2)

    @pl.when(k == 0)
    def _():
        acc_ref[...] = jnp.zeros_like(acc_ref)

    a = x_ref[...]
    w = w_ref[...]
    if mxu_dtype is not None:
        a = a.astype(mxu_dtype)
        w = w.astype(mxu_dtype)
    acc_ref[...] += jnp.dot(a, w, preferred_element_type=jnp.float32)

    # tn == tk, so at k == j the x tile (i, k) is exactly the residual tile
    # (i, j).  Fold it in (pre-divided by module_scale; re-multiplied below).
    @pl.when(k == j)
    def _():
        acc_ref[...] += (input_scale / module_scale) * x_ref[...].astype(jnp.float32)

    @pl.when(k == pl.num_programs(2) - 1)
    def _():
        o_ref[...] = (module_scale * acc_ref[...] + bs_ref[...]).astype(o_ref.dtype)


# --------------------------------------------------------------------------- #
# Tiling / budgeting helpers
# --------------------------------------------------------------------------- #
def _round_up(v: int, m: int) -> int:
    return (v + m - 1) // m * m


def _pick_hidden_tile(h_pad: int, cap: int) -> int:
    """Largest multiple of 128 that divides h_pad and is <= cap (min 128)."""
    t = max(128, min((cap // 128) * 128, h_pad))
    while h_pad % t != 0:
        t -= 128
    return t


def _pick_m_tile(m: int, cap: int):
    """Largest tm (<= cap) whose M padding waste stays below ~12.5%."""
    for tm in (512, 256, 128, 64, 32, 16, 8):
        if tm > cap:
            continue
        m_pad = _round_up(m, tm)
        if m_pad == m or (m_pad - m) <= max(m_pad // 8, 8):
            return tm, m_pad
    return 8, _round_up(m, 8)


def _vmem_budget() -> int:
    """Physical VMEM minus headroom, per generation (v7x: ~48 MiB, v5e/v6e: ~112 MiB)."""
    try:
        phys = pltpu.get_tpu_info().vmem_capacity_bytes
    except Exception:
        phys = 64 << 20                        # conservative fallback
    return max(int(phys) - (16 << 20), 16 << 20)


def _weight_spec(block_shape, index_map, n_blocks):
    """Weight BlockSpec; 3-deep buffering when the weight is actually streamed."""
    if n_blocks >= 3:
        try:
            return pl.BlockSpec(block_shape, index_map,
                                pipeline_mode=pl.Buffered(3))
        except TypeError:
            pass
    return pl.BlockSpec(block_shape, index_map)


# --------------------------------------------------------------------------- #
# Parameter preparation (done ONCE, hoisted out of the per-call hot path)
# --------------------------------------------------------------------------- #
def prepare_residual_linear_params(w, b, module_scale, *,
                                   weight_is_out_in: bool = False,
                                   param_dtype=None):
    """Pads W to (H_pad, H_pad) and returns f32 (1, H_pad) bias pre-scaled by
    module_scale.  Pass weight_is_out_in=True for PyTorch nn.Linear layout.
    The same module_scale must later be passed to residual_connection_forward."""
    if weight_is_out_in:
        w = w.T
    h_in, h_out = w.shape
    assert h_in == h_out, "ResidualConnection requires a square (H, H) Linear"
    H = h_in
    H_pad = _round_up(H, 128)
    if param_dtype is not None:
        w = w.astype(param_dtype)
    b_scaled = (float(module_scale) * b.astype(jnp.float32)).reshape(1, H)
    if H_pad != H:
        w = jnp.pad(w, ((0, H_pad - H), (0, H_pad - H)))
        b_scaled = jnp.pad(b_scaled, ((0, 0), (0, H_pad - H)))
    return w, b_scaled


# --------------------------------------------------------------------------- #
# Forward
# --------------------------------------------------------------------------- #
def residual_linear(x2d, w_pad, b_scaled, *, input_scale=1.0, module_scale=1.0,
                    mxu_dtype=None):
    """x2d: (M, H).  w_pad: (H_pad, H_pad) pre-padded.  b_scaled: (1, H_pad) f32."""
    M, H = x2d.shape
    H_pad = w_pad.shape[0]
    assert w_pad.shape == (H_pad, H_pad) and b_scaled.shape == (1, H_pad)
    assert H <= H_pad and H_pad % 128 == 0

    if module_scale == 0.0:
        # Degenerate config: module output is discarded entirely.
        return (input_scale * x2d).astype(x2d.dtype)

    dt_x = x2d.dtype.itemsize
    dt_w = w_pad.dtype.itemsize
    budget = _vmem_budget()

    tm_cap = 512 if M >= 2048 else 256          # keep >=4 parallel tiles for v7x
    tm, M_pad = _pick_m_tile(M, tm_cap)
    tn = _pick_hidden_tile(H_pad, 1024)

    def plan_a_bytes(tm_):
        return (2 * tm_ * H_pad * dt_x          # x blocks (double-buffered)
                + 2 * H_pad * H_pad * dt_w      # resident weight
                + 2 * 8 * H_pad * 4             # bias (sublane-padded)
                + 2 * tm_ * H_pad * dt_x)       # output blocks

    def plan_b_bytes(tm_, tn_):
        return (2 * tm_ * tn_ * dt_x            # x blocks
                + 3 * tn_ * tn_ * dt_w          # weight (3-deep buffer)
                + 2 * 8 * tn_ * 4               # bias
                + 2 * tm_ * tn_ * dt_x          # output
                + tm_ * tn_ * 4)                # f32 accumulator

    use_plan_a = plan_a_bytes(tm) <= budget

    scales = dict(input_scale=float(input_scale),
                  module_scale=float(module_scale), mxu_dtype=mxu_dtype)

    if use_plan_a:
        est = plan_a_bytes(tm)
    else:
        while plan_b_bytes(tm, tn) > budget and tn > 128:
            tn = _pick_hidden_tile(H_pad, tn - 128)
        while plan_b_bytes(tm, tn) > budget and tm > 8:
            tm = max(8, tm // 2)
        M_pad = _round_up(M, tm)
        est = plan_b_bytes(tm, tn)

    # Pad x per call only when needed (parameters are already padded).
    if (M_pad != M) or (H_pad != H):
        x_p = jnp.pad(x2d, ((0, M_pad - M), (0, H_pad - H)))
    else:
        x_p = x2d

    vmem_limit = int(min(max(est + (8 << 20), 32 << 20), budget))

    if use_plan_a:
        kernel = functools.partial(_fused_row_kernel, **scales)
        out = pl.pallas_call(
            kernel,
            out_shape=jax.ShapeDtypeStruct((M_pad, H_pad), x2d.dtype),
            grid=(M_pad // tm,),
            in_specs=[
                pl.BlockSpec((tm, H_pad), lambda i: (i, 0)),        # x
                _weight_spec((H_pad, H_pad), lambda i: (0, 0), 1),  # W (resident)
                pl.BlockSpec((1, H_pad), lambda i: (0, 0)),         # scaled bias
            ],
            out_specs=pl.BlockSpec((tm, H_pad), lambda i: (i, 0)),
            compiler_params=pltpu.CompilerParams(
                dimension_semantics=("parallel",),
                vmem_limit_bytes=vmem_limit),
        )(x_p, w_pad, b_scaled)
    else:
        tk = tn                                  # required by the k == j fold
        grid = (M_pad // tm, H_pad // tn, H_pad // tk)
        n_w_blocks = (H_pad // tn) * (H_pad // tk)
        kernel = functools.partial(_multi_k_kernel, **scales)
        out = pl.pallas_call(
            kernel,
            out_shape=jax.ShapeDtypeStruct((M_pad, H_pad), x2d.dtype),
            grid=grid,
            in_specs=[
                pl.BlockSpec((tm, tk), lambda i, j, k: (i, k)),               # x
                _weight_spec((tk, tn), lambda i, j, k: (k, j), n_w_blocks),   # W
                pl.BlockSpec((1, tn), lambda i, j, k: (0, j)),                # bias
            ],
            out_specs=pl.BlockSpec((tm, tn), lambda i, j, k: (i, j)),
            scratch_shapes=[pltpu.VMEM((tm, tn), jnp.float32)],
            compiler_params=pltpu.CompilerParams(
                dimension_semantics=("parallel", "parallel", "arbitrary"),
                vmem_limit_bytes=vmem_limit),
        )(x_p, w_pad, b_scaled)

    if (M_pad != M) or (H_pad != H):
        out = out[:M, :H]
    return out


def residual_connection_forward(x, w_pad, b_scaled, *, input_scale=1.0,
                                module_scale=1.0, mxu_dtype=None):
    """x: (batch, seq, hidden). Parameters from prepare_residual_linear_params."""
    B, S, H = x.shape
    out2d = residual_linear(x.reshape(B * S, H), w_pad, b_scaled,
                            input_scale=input_scale, module_scale=module_scale,
                            mxu_dtype=mxu_dtype)
    return out2d.reshape(B, S, H)


# --------------------------------------------------------------------------- #
# Demo / correctness check
# --------------------------------------------------------------------------- #
if __name__ == "__main__":
    batch, seq, hidden = 2, 8, 32
    input_scale, module_scale = 0.7, 1.3

    key = jax.random.PRNGKey(0)
    kx, kw, kb = jax.random.split(key, 3)
    x = jax.random.normal(kx, (batch, seq, hidden), dtype=jnp.float32)
    # Inner-module (Linear) parameters, stored as (in, out).
    w = (jax.random.normal(kw, (hidden, hidden), dtype=jnp.float32)
         / jnp.sqrt(float(hidden)))
    b = jax.random.normal(kb, (hidden,), dtype=jnp.float32) * 0.1

    # Padding / bias pre-scaling done once (outside the per-call hot path).
    w_pad, b_scaled = prepare_residual_linear_params(w, b, module_scale)

    out = residual_connection_forward(
        x, w_pad, b_scaled,
        input_scale=input_scale, module_scale=module_scale,
        mxu_dtype=None)  # set jnp.bfloat16 for MXU-peak bf16 matmul on v6e/v7x
    out = jax.block_until_ready(out)

    # Pure-JAX reference of the exact PyTorch semantics.
    ref = input_scale * x + module_scale * (
        jnp.einsum("bsh,hk->bsk", x, w) + b.reshape(1, 1, hidden))

    assert out.shape == x.shape and out.dtype == x.dtype
    assert jnp.allclose(out, ref, atol=1e-5, rtol=1e-5), "mismatch vs reference"
    print("KERNEL_OK")
</pallas_src>

<mosaic_0001>
module attributes {stable_mosaic.version = 11 : i64} {
  func.func @_fused_row_kernel(%arg0: i32, %arg1: memref<16x128xf32, #tpu.memory_space<vmem>>, %arg2: memref<128x128xf32, #tpu.memory_space<vmem>>, %arg3: memref<1x128xf32, #tpu.memory_space<vmem>>, %arg4: memref<16x128xf32, #tpu.memory_space<vmem>>) attributes {dimension_semantics = [#tpu.dimension_semantics<parallel>], iteration_bounds = array<i64: 1>, scalar_prefetch = 0 : i64, scratch_operands = 0 : i64, tpu.core_type = #tpu.core_type<tc>, window_params = [{transform_indices = @transform_0, window_bounds = array<i64: 16, 128>}, {pipeline_mode = #tpu.pipeline_mode<synchronous>, transform_indices = @transform_1, window_bounds = array<i64: 128, 128>}, {pipeline_mode = #tpu.pipeline_mode<synchronous>, transform_indices = @transform_2, window_bounds = array<i64: 1, 128>}, {transform_indices = @transform_3, window_bounds = array<i64: 16, 128>}]} {
    %c0 = arith.constant 0 : index
    %c0_0 = arith.constant 0 : index
    %0 = vector.load %arg1[%c0, %c0_0] : memref<16x128xf32, #tpu.memory_space<vmem>>, vector<16x128xf32>
    %c0_1 = arith.constant 0 : index
    %c0_2 = arith.constant 0 : index
    %1 = vector.load %arg2[%c0_1, %c0_2] : memref<128x128xf32, #tpu.memory_space<vmem>>, vector<128x128xf32>
    %cst = arith.constant dense<0.000000e+00> : vector<16x128xf32>
    %2 = tpu.matmul %0, %1, %cst {dimension_numbers = #tpu.dot_dimension_numbers<[1], [0], [0], [1], [0, 0, 1, 1], [], []>} : vector<16x128xf32>, vector<128x128xf32>, vector<16x128xf32> -> vector<16x128xf32>
    %c0_3 = arith.constant 0 : index
    %c0_4 = arith.constant 0 : index
    %3 = vector.load %arg1[%c0_3, %c0_4] : memref<16x128xf32, #tpu.memory_space<vmem>>, vector<16x128xf32>
    %cst_5 = arith.constant 0.699999988 : f32
    %4 = vector.broadcast %cst_5 : f32 to vector<16x128xf32>
    %5 = arith.mulf %4, %3 : vector<16x128xf32>
    %cst_6 = arith.constant 1.300000e+00 : f32
    %6 = vector.broadcast %cst_6 : f32 to vector<16x128xf32>
    %7 = arith.mulf %6, %2 : vector<16x128xf32>
    %8 = arith.addf %5, %7 : vector<16x128xf32>
    %c0_7 = arith.constant 0 : index
    %c0_8 = arith.constant 0 : index
    %9 = vector.load %arg3[%c0_7, %c0_8] : memref<1x128xf32, #tpu.memory_space<vmem>>, vector<1x128xf32>
    %10 = vector.broadcast %9 : vector<1x128xf32> to vector<16x128xf32>
    %11 = arith.addf %8, %10 : vector<16x128xf32>
    %c0_9 = arith.constant 0 : index
    %c0_10 = arith.constant 0 : index
    %12 = vector.load %arg4[%c0_9, %c0_10] : memref<16x128xf32, #tpu.memory_space<vmem>>, vector<16x128xf32>
    tpu.vector_store %arg4[%c0_9, %c0_10], %11 {strides = array<i32>} : memref<16x128xf32, #tpu.memory_space<vmem>>, vector<16x128xf32>,
    return
  }
  func.func @transform_0(%arg0: i32) -> (i32, i32) {
    %c0_i32 = arith.constant 0 : i32
    %c0_i32_0 = arith.constant 0 : i32
    return %arg0, %c0_i32 : i32, i32
  }
  func.func @transform_1(%arg0: i32) -> (i32, i32) {
    %c0_i32 = arith.constant 0 : i32
    %c0_i32_0 = arith.constant 0 : i32
    %c0_i32_1 = arith.constant 0 : i32
    return %c0_i32, %c0_i32_0 : i32, i32
  }
  func.func @transform_2(%arg0: i32) -> (i32, i32) {
    %c0_i32 = arith.constant 0 : i32
    %c0_i32_0 = arith.constant 0 : i32
    %c0_i32_1 = arith.constant 0 : i32
    return %c0_i32, %c0_i32_0 : i32, i32
  }
  func.func @transform_3(%arg0: i32) -> (i32, i32) {
    %c0_i32 = arith.constant 0 : i32
    %c0_i32_0 = arith.constant 0 : i32
    return %arg0, %c0_i32 : i32, i32
  }
}

</mosaic_0001>

<bundles_post_ra>
// kernel: tpu_custom_call.1
= control target key start
LH: loop header
LB: loop body
LE: loop exit
PB: predicated region body
PF: predicated region fallthrough
CT: control target
= control target key end

     0   :  { %8 = vsyncpa [#allocation3], 0  ;;  %s407_s0 = inlined_call_operand.hbm [shape: f32[16,128], index: 0, kind: input, shape index: {}]   ;;  %s408_s1 = inlined_call_operand.hbm [shape: f32[128,128], index: 1, kind: input, shape index: {}]   ;;  %s409_s2 = inlined_call_operand.vmem [shape: f32[1,128], index: 2, kind: input, shape index: {}]   ;;  %s410_s3 = inlined_call_operand.hbm [shape: f32[16,128], index: 3, kind: output, shape index: {}]  }
   0x1   :  { %9 = vsyncpa [#allocation6], 0 }
   0x2   :  { %10 = vsyncpa [#allocation4], 0  ;;  %s334_s12 = smov [#allocation2]   ;;  %s262_s16 = scalar_lea.hbm %s407_s0, 256 }
   0x3   :  { %s16_s13 = sshll.u32 %s334_s12, 4  ;;  %p263_p0 = scmp.ne.s32.totalorder %s407_s0, %s262_s16  ;;  %s17_s13 = int_to_ptr.vmem [resolvable:$true] %s16_s13 }
   0x4   :  { %p266_p1 = scmp.lt.u32.totalorder %s262_s16, %s407_s0 }
   0x6   :  { %p268_p2 = pnand %p266_p1, %p263_p0 }
   0x8   :  { %271 = shalt.err (!%p268_p2)
}
   0x9   :  { %s272_s21 = scalar_lea.vmem %s17_s13, 256  ;;  %p277_p4 = scmp.lt.s32.totalorder %s17_s13, %s17_s13 }
   0xa   :  { %p273_p3 = scmp.ne.s32.totalorder %s17_s13, %s272_s21  ;;  %p278_p5 = scmp.lt.s32.totalorder %s272_s21, %s272_s21 }
   0xc   :  { %p279_p6 = por %p278_p5, %p277_p4 }
   0xe   :  { %p280_p7 = pnand %p279_p6, %p273_p3 }
  0x10   :  { %283 = shalt.err (!%p280_p7)
}
  0x11   :  { %s335_s22 = smov 128   ;;  %s336_s23 = smov 8  }
  0x12   :  { %22 = dma.hbm_to_vmem [thread:$0]  %s407_s0, 256, %s17_s13, [#allocation3], %s335_s22, %s335_s22, %s336_s23  }
  0x13   :  { %s337_s26 = smov [#allocation5]   ;;  %s284_s30 = scalar_lea.hbm %s408_s1, 2048 }
  0x14   :  { %s28_s27 = sshll.u32 %s337_s26, 4  ;;  %p285_p8 = scmp.ne.s32.totalorder %s408_s1, %s284_s30  ;;  %s29_s27 = int_to_ptr.vmem [resolvable:$true] %s28_s27 }
  0x15   :  { %p288_p9 = scmp.lt.u32.totalorder %s284_s30, %s408_s1 }
  0x17   :  { %p290_p10 = pnand %p288_p9, %p285_p8 }
  0x19   :  { %293 = shalt.err (!%p290_p10)
}
  0x1a   :  { %s294_s8 = scalar_lea.vmem %s29_s27, 2048  ;;  %p299_p12 = scmp.lt.s32.totalorder %s29_s27, %s29_s27 }
  0x1b   :  { %p295_p11 = scmp.ne.s32.totalorder %s29_s27, %s294_s8  ;;  %p300_p13 = scmp.lt.s32.totalorder %s294_s8, %s294_s8 }
  0x1d   :  { %p301_p0 = por %p300_p13, %p299_p12 }
  0x1f   :  { %p302_p1 = pnand %p301_p0, %p295_p11 }
  0x21   :  { %305 = shalt.err (!%p302_p1)
}
  0x22   :  { %34 = dma.hbm_to_vmem [thread:$0]  %s408_s1, 2048, %s29_s27, [#allocation6], %s335_s22, %s335_s22, %s336_s23  }
  0x23   :  { %328 = dma.done.wait [#allocation3], 256  }
  0x24   :  { %329 = vsyncadd [#allocation3], 4294967040 }
  0x25   :  { %330 = dma.done.wait [#allocation6], 2048  }
  0x26   :  { %331 = vsyncadd [#allocation6], 4294965248  ;;  %v45_v0 = vld [vmem:[#allocation5] sm:$0xff]  ;;  %v46_v1 = vld [vmem:[#allocation5 + $0x8] sm:$0xff]  ;;  %s338_s11 = smov [#allocation7]  }
  0x27   :  { %v47_v2 = vld [vmem:[#allocation5 + $0x10] sm:$0xff]  ;;  %v225_v3 = vpack.c.bf16 %v46_v1, %v45_v0  ;;  %v48_v4 = vld [vmem:[#allocation5 + $0x18] sm:$0xff]  ;;  %v49_v6 = vld [vmem:[#allocation5 + $0x20] sm:$0xff]  ;;  %s158_s12 = sshll.u32 %s338_s11, 4  ;;  %s159_s12 = int_to_ptr.vmem [resolvable:$true] %s158_s12 }
  0x28   :  { %v229_v5 = vpack.c.bf16 %v48_v4, %v47_v2  ;;  %v50_v7 = vld [vmem:[#allocation5 + $0x28] sm:$0xff]  ;;  %v43_v9 = vld [vmem:[#allocation2] sm:$0xff]  ;;  %v52_v11 = vld [vmem:[#allocation5 + $0x38] sm:$0xff]  ;;  %s306_s13 = scalar_lea.vmem %s159_s12, 256  ;;  %p311_p3 = scmp.lt.s32.totalorder %s159_s12, %s159_s12 }
  0x29   :  { %226 = vmatprep.subr.bf16.mxu0 %v225_v3  ;;  %v233_v8 = vpack.c.bf16 %v50_v7, %v49_v6  ;;  %v51_v10 = vld [vmem:[#allocation5 + $0x30] sm:$0xff]  ;;  %222 = vmatprep.mubr.f32.mxu0 %v43_v9  ;;  %v53_v13 = vld [vmem:[#allocation5 + $0x40] sm:$0xff]  ;;  %v54_v14 = vld [vmem:[#allocation5 + $0x48] sm:$0xff]  ;;  %v136_v27 = vmul.f32 0.7, %v43_v9  ;;  %p307_p2 = scmp.ne.s32.totalorder %s159_s12, %s306_s13  ;;  %p312_p4 = scmp.lt.s32.totalorder %s306_s13, %s306_s13 }
  0x2a   :  { %228 = vmatpush3.bf16.msra.mxu0 %v225_v3  ;;  %v237_v12 = vpack.c.bf16 %v52_v11, %v51_v10  ;;  %v241_v15 = vpack.c.bf16 %v54_v14, %v53_v13  ;;  %v55_v16 = vld [vmem:[#allocation5 + $0x50] sm:$0xff]  ;;  %v56_v17 = vld [vmem:[#allocation5 + $0x58] sm:$0xff]  ;;  %v57_v19 = vld [vmem:[#allocation5 + $0x60] sm:$0xff] }
  0x2b   :  { %230 = vmatprep.subr.bf16.mxu0 %v229_v5  ;;  %v245_v18 = vpack.c.bf16 %v56_v17, %v55_v16  ;;  %v58_v20 = vld [vmem:[#allocation5 + $0x68] sm:$0xff]  ;;  %v59_v22 = vld [vmem:[#allocation5 + $0x70] sm:$0xff]  ;;  %v60_v23 = vld [vmem:[#allocation5 + $0x78] sm:$0xff]  ;;  %p313_p5 = por %p312_p4, %p311_p3 }
  0x2c   :  { %v249_v21 = vpack.c.bf16 %v58_v20, %v57_v19  ;;  %v253_v24 = vpack.c.bf16 %v60_v23, %v59_v22  ;;  %v44_v25 = vld [vmem:[#allocation2 + $0x8] sm:$0xff]  ;;  %v171_v31 = vld [vmem:[%s409_s2] ss:$0 sm:$0xff] }
  0x2d   :  { %v137_v26 = vmul.f32 0.7, %v44_v25  ;;  %p314_p6 = pnand %p313_p5, %p307_p2 }
  0x2e   :  { %232 = vmatpush3.bf16.msra.mxu0 %v229_v5 }
  0x2f   :  { %234 = vmatprep.subr.bf16.mxu0 %v233_v8 }
  0x32   :  { %236 = vmatpush3.bf16.msra.mxu0 %v233_v8 }
  0x33   :  { %238 = vmatprep.subr.bf16.mxu0 %v237_v12 }
  0x36   :  { %240 = vmatpush3.bf16.msra.mxu0 %v237_v12 }
  0x37   :  { %242 = vmatprep.subr.bf16.mxu0 %v241_v15 }
  0x3a   :  { %244 = vmatpush3.bf16.msra.mxu0 %v241_v15 }
  0x3b   :  { %246 = vmatprep.subr.bf16.mxu0 %v245_v18 }
  0x3e   :  { %248 = vmatpush3.bf16.msra.mxu0 %v245_v18 }
  0x3f   :  { %250 = vmatprep.subr.bf16.mxu0 %v249_v21 }
  0x42   :  { %252 = vmatpush3.bf16.msra.mxu0 %v249_v21 }
  0x43   :  { %254 = vmatprep.subr.bf16.mxu0 %v253_v24 }
  0x46   :  { %256 = vmatpush3.bf16.msra.mxu0 %v253_v24 }
  0x49   :  { %223 = vmatmul.mubr.f32.vlgmr.msra.gmra.mrb[0].mxu0 %v44_v25 }
 0x11c   :  { %v224_v28 = vpop.f32.mrb[0].mxu0 }
 0x11d   :  { %v139_v29 = vmul.f32 1.3, %v224_v28  ;;  %v127_v30 = vpop.f32.mrb[1].mxu0 }
 0x11e   :  { %v138_v32 = vmul.f32 1.3, %v127_v30 }
 0x11f   :  { %v141_v33 = vadd.f32 %v139_v29, %v137_v26 }
 0x120   :  { %v140_v34 = vadd.f32 %v138_v32, %v136_v27 }
 0x121   :  { %v150_v35 = vadd.f32 %v171_v31, %v141_v33 }
 0x122   :  { %v149_v36 = vadd.f32 %v171_v31, %v140_v34 }
 0x123   :  { %152 = vst [vmem:[#allocation7 + $0x8] sm:$0xff] %v150_v35 }
 0x124   :  { %151 = vst [vmem:[#allocation7] sm:$0xff] %v149_v36 }
 0x125   :  { %317 = shalt.err (!%p314_p6)
}
 0x126   :  { %s318_s2 = scalar_lea.hbm %s410_s3, 256 }
 0x127   :  { %p319_p7 = scmp.ne.s32.totalorder %s410_s3, %s318_s2  ;;  %p322_p8 = scmp.lt.u32.totalorder %s318_s2, %s410_s3 }
 0x129   :  { %p324_p9 = pnand %p322_p8, %p319_p7 }
 0x12b   :  { %327 = shalt.err (!%p324_p9)
}
 0x12c   :  { %164 = dma.vmem_to_hbm [thread:$0]  %s159_s12, 256, %s410_s3, [#allocation4], %s335_s22, %s335_s22, %s336_s23  }
 0x12d   :  { %332 = dma.done.wait [#allocation4], 256  }
 0x12e   :  { %333 = vsyncadd [#allocation4], 4294967040 }
 0x12f   :  { %168 = vsyncpa [#allocation3], 1 }
 0x130   :  { %169 = vsyncpa [#allocation6], 1 }
 0x131   :  { %170 = vsyncpa [#allocation4], 1 }

</bundles_post_ra>
